<compile_context>
chip_gen: v5e
topology: v5e:2x2
jax: 0.10.0
libtpu: 0.0.40
codegen_flags: <defaults>
</compile_context>

<pallas_src>
import math

import jax
import jax.numpy as jnp
from jax.experimental import pallas as pl
from jax.experimental.pallas import tpu as pltpu


_LANE = 128
_FOLD_CAP = 1024              # max folded row width (lanes)
_LANE_BLOCK_CAP = 8192        # lane-axis tile for very wide feature dims
_MIN_PALLAS_BYTES = 1 << 20   # below ~1 MiB of x, plain XLA wins


def _cdiv(a, b):
    return -(-a // b)


def _round_up(a, m):
    return _cdiv(a, m) * m


def _sublane_multiple(dtype) -> int:
    # Sublane packing granularity: f32 -> 8, bf16/fp16 -> 16, int8/fp8 -> 32.
    itemsize = jnp.dtype(dtype).itemsize
    return max(8, (4 // max(1, itemsize)) * 8)


def _device_tuning():
    """Per-TPU-generation tile / VMEM / megacore settings."""
    try:
        kind = jax.devices()[0].device_kind.lower()
    except Exception:
        kind = ""
    if "v7" in kind or "7x" in kind:
        # 2 TCs, 64 MiB physical VMEM, ~3.2 TB/s HBM: bigger tiles, even grid,
        # explicit scoped-VMEM headroom (do NOT budget like 128 MiB chips).
        return dict(target_tile_bytes=6 << 20, vmem_limit=48 << 20, num_cores=2)
    if "v6" in kind:
        # Single TC, 32 MiB default scoped VMEM; 2 MiB tiles are already at the
        # measured HBM-roofline knee, so no need to grow them.
        return dict(target_tile_bytes=2 << 20, vmem_limit=None, num_cores=1)
    # v5e and older / unknown: 2 MiB tiles keep the double-buffered working set
    # (~8 MiB in+out) safely under the 16 MiB default scoped-VMEM limit.
    return dict(target_tile_bytes=2 << 20, vmem_limit=None, num_cores=1)


def _elementwise_linear_kernel(x_ref, w_ref, b_ref, o_ref):
    # Fused scale + shift on the VPU; explicit cast so mixed precision
    # (e.g. bf16 x with f32 params) writes back in x's dtype intentionally.
    o_ref[...] = (x_ref[...] * w_ref[...] + b_ref[...]).astype(o_ref.dtype)


def elementwise_linear(x, weight=None, bias=None, *, block_rows=None,
                       lane_block=None, use_pallas=None, alias_input=False,
                       buffer_count=None):
    """y = x * weight + bias, weight/bias of shape (size,) or None.

    x: [..., size]. Leading dims are flattened to rows for the kernel and
    restored afterwards (glue in plain JAX).
    """
    orig_shape = x.shape
    size = orig_shape[-1]

    if weight is None and bias is None:
        return x
    if weight is None:
        weight = jnp.ones((size,), dtype=x.dtype)
    if bias is None:
        bias = jnp.zeros((size,), dtype=x.dtype)
    assert weight.shape == (size,) and bias.shape == (size,)

    dtype_bytes = jnp.dtype(x.dtype).itemsize
    n_bytes = x.size * dtype_bytes
    if use_pallas is None:
        use_pallas = n_bytes >= _MIN_PALLAS_BYTES
    if not use_pallas or x.size == 0:
        # Small input: kernel-launch overhead + fusion barrier dwarf the work.
        return (x * weight + bias).astype(x.dtype)

    x2d = x.reshape(-1, size)
    n_rows, lane_w = x2d.shape
    w_row, b_row = weight, bias

    # --- Generalized lane-dense fold: pack rows so the row width is a
    # multiple of 128 lanes (lcm(size, 128), capped) -> unmasked stores.
    if lane_w % _LANE != 0:
        folded_w = (lane_w * _LANE) // math.gcd(lane_w, _LANE)   # lcm(size,128)
        if folded_w <= _FOLD_CAP:
            factor = folded_w // lane_w
            if n_rows % factor == 0:
                x2d = x2d.reshape(n_rows // factor, folded_w)
                w_row = jnp.tile(weight, factor)
                b_row = jnp.tile(bias, factor)
                n_rows, lane_w = x2d.shape

    tune = _device_tuning()
    sub = _sublane_multiple(x.dtype)
    num_cores = tune["num_cores"]

    # --- Lane-axis tiling for very wide feature dims (VMEM safety).
    if lane_block is None:
        lane_block = lane_w if lane_w <= _LANE_BLOCK_CAP else _LANE_BLOCK_CAP
    else:
        lane_block = int(lane_block)
        assert lane_block == lane_w or lane_block % _LANE == 0
    grid_lanes = _cdiv(lane_w, lane_block)

    # --- Row tiling: ~target_tile_bytes of x per step, but never a 1-step
    # grid for medium inputs (keeps the DMA pipeline busy; on v7x keeps both
    # TensorCores busy with a core-count-multiple tile count).
    if block_rows is None:
        target_rows = max(
            sub,
            (tune["target_tile_bytes"] // max(1, lane_block * dtype_bytes))
            // sub * sub)
        min_tiles = 1
        if n_rows > 2 * sub:
            min_tiles = 2
        if num_cores > 1 and n_rows > 4 * sub:
            min_tiles = 4
        desired = max(min_tiles, _cdiv(n_rows, target_rows))
        if num_cores > 1 and desired > 1:
            desired = _round_up(desired, num_cores)
        desired = min(desired, _cdiv(n_rows, sub))
        block_rows = max(sub, _round_up(_cdiv(n_rows, desired), sub))
    else:
        block_rows = max(sub, _round_up(int(block_rows), sub))
    block_rows = min(block_rows, _round_up(n_rows, sub))
    grid_rows = _cdiv(n_rows, block_rows)

    # v7x balance fix-up: prefer a tile count that is a multiple of the core
    # count so neither TensorCore idles on the tail wave.
    if num_cores > 1 and grid_rows > 1 and grid_rows % num_cores != 0:
        alt = max(sub, _round_up(
            _cdiv(n_rows, _round_up(grid_rows, num_cores)), sub))
        if _cdiv(n_rows, alt) % num_cores == 0:
            block_rows = alt
            grid_rows = _cdiv(n_rows, alt)

    grid = (grid_rows, grid_lanes)

    w2d = w_row.reshape(1, lane_w)
    b2d = b_row.reshape(1, lane_w)
    # NOTE: params stay (1, lane_w); the per-tile sublane broadcast rides in
    # VPU slack (kernel is HBM-bound), so pre-broadcasting to (sub, lane_w)
    # buys nothing measurable and would complicate the in-kernel broadcast.

    pm = {}
    if buffer_count is not None:
        # Optional deeper pipelining; treat as a sweep knob, not a default.
        pm = dict(pipeline_mode=pl.Buffered(int(buffer_count)))

    x_spec = pl.BlockSpec((block_rows, lane_block), lambda i, j: (i, j), **pm)
    o_spec = pl.BlockSpec((block_rows, lane_block), lambda i, j: (i, j), **pm)
    p_spec = pl.BlockSpec((1, lane_block), lambda i, j: (0, j))

    param_bytes = (w2d.size + b2d.size) * jnp.dtype(w2d.dtype).itemsize
    cost = pl.CostEstimate(
        flops=2 * x2d.size,
        transcendentals=0,
        bytes_accessed=2 * x2d.size * dtype_bytes + param_bytes,
    )

    cp_kwargs = dict(dimension_semantics=("parallel", "parallel"))
    if tune["vmem_limit"] is not None:
        cp_kwargs["vmem_limit_bytes"] = tune["vmem_limit"]

    # TODO(synk): inplace=True (x.mul_/add_) has no in-place semantics in JAX;
    # alias_input=True approximates it by aliasing x's buffer to the output on
    # the Pallas path only (best effort, not guaranteed).
    io_aliases = {0: 0} if alias_input else {}

    out = pl.pallas_call(
        _elementwise_linear_kernel,
        out_shape=jax.ShapeDtypeStruct((n_rows, lane_w), x.dtype),
        grid_spec=pltpu.PrefetchScalarGridSpec(
            num_scalar_prefetch=0,
            grid=grid,
            in_specs=[x_spec, p_spec, p_spec],
            out_specs=o_spec,
        ),
        compiler_params=pltpu.CompilerParams(**cp_kwargs),
        cost_estimate=cost,
        input_output_aliases=io_aliases,
    )(x2d, w2d, b2d)

    return out.reshape(orig_shape)


if __name__ == "__main__":
    key = jax.random.PRNGKey(0)
    kx, kw, kb, k3, k4, k5, k6 = jax.random.split(key, 7)

    size = 32
    n_nodes = 2048   # GAT node features: x is [num_nodes, size]
    x = jax.random.normal(kx, (n_nodes, size), dtype=jnp.float32)

    # --- Test 1: default init (reset_parameters: ones / zeros), Pallas path,
    #             forced multi-step grid to exercise tiling + index_map.
    weight = jnp.ones((size,), dtype=jnp.float32)
    bias = jnp.zeros((size,), dtype=jnp.float32)
    y = jax.block_until_ready(
        elementwise_linear(x, weight, bias, block_rows=128, use_pallas=True))
    y_ref = x * weight + bias
    assert y.shape == x.shape and y.dtype == x.dtype
    assert jnp.allclose(y, y_ref, atol=1e-6, rtol=1e-6)

    # --- Test 2: random weight/bias (exercises the broadcast) with the
    #             generalized lane-dense fold (32 -> 128) and auto tiling.
    w_rand = jax.random.normal(kw, (size,), dtype=jnp.float32)
    b_rand = jax.random.normal(kb, (size,), dtype=jnp.float32)
    y2 = jax.block_until_ready(
        elementwise_linear(x, w_rand, b_rand, use_pallas=True))
    assert jnp.allclose(y2, x * w_rand + b_rand, atol=1e-5, rtol=1e-5)

    # --- Test 3: 3-D input (leading dims flattened and restored).
    x3 = jax.random.normal(k3, (2, 512, size), dtype=jnp.float32)
    y3 = jax.block_until_ready(
        elementwise_linear(x3, w_rand, b_rand, use_pallas=True))
    assert y3.shape == x3.shape
    assert jnp.allclose(y3, x3 * w_rand + b_rand, atol=1e-5, rtol=1e-5)

    # --- Test 4: non-power-of-two feature size (96 -> lcm fold to 384 lanes).
    s96 = 96
    x96 = jax.random.normal(k4, (256, s96), dtype=jnp.float32)
    w96 = jax.random.normal(kw, (s96,), dtype=jnp.float32)
    b96 = jax.random.normal(kb, (s96,), dtype=jnp.float32)
    y96 = jax.block_until_ready(
        elementwise_linear(x96, w96, b96, use_pallas=True))
    assert jnp.allclose(y96, x96 * w96 + b96, atol=1e-5, rtol=1e-5)

    # --- Test 5: lane-axis tiling path (2-D grid, params indexed by j).
    s384 = 384
    x384 = jax.random.normal(k5, (64, s384), dtype=jnp.float32)
    w384 = jax.random.normal(kw, (s384,), dtype=jnp.float32)
    b384 = jax.random.normal(kb, (s384,), dtype=jnp.float32)
    y384 = jax.block_until_ready(
        elementwise_linear(x384, w384, b384, use_pallas=True, lane_block=128))
    assert jnp.allclose(y384, x384 * w384 + b384, atol=1e-5, rtol=1e-5)

    # --- Test 6: mixed precision (bf16 activations, f32 params).
    xb = jax.random.normal(k6, (128, 256), dtype=jnp.bfloat16)
    wb = jax.random.normal(kw, (256,), dtype=jnp.float32)
    bb = jax.random.normal(kb, (256,), dtype=jnp.float32)
    yb = jax.block_until_ready(
        elementwise_linear(xb, wb, bb, use_pallas=True))
    yb_ref = (xb * wb + bb).astype(jnp.bfloat16)
    assert yb.dtype == jnp.bfloat16
    assert jnp.allclose(yb.astype(jnp.float32), yb_ref.astype(jnp.float32),
                        atol=2e-2, rtol=2e-2)

    # --- Test 7: tiny input takes the plain-JAX fallback; bias=None path.
    x_small = jax.random.normal(kx, (8, size), dtype=jnp.float32)
    y7 = jax.block_until_ready(elementwise_linear(x_small, w_rand, b_rand))
    assert jnp.allclose(y7, x_small * w_rand + b_rand, atol=1e-6, rtol=1e-6)
    y7b = jax.block_until_ready(elementwise_linear(x_small, w_rand, None))
    assert jnp.allclose(y7b, x_small * w_rand, atol=1e-6, rtol=1e-6)

    print("KERNEL_OK")
</pallas_src>

<mosaic_0001>
module attributes {stable_mosaic.version = 11 : i64} {
  func.func @_elementwise_linear_kernel(%arg0: i32, %arg1: i32, %arg2: memref<128x128xf32, #tpu.memory_space<vmem>>, %arg3: memref<1x128xf32, #tpu.memory_space<vmem>>, %arg4: memref<1x128xf32, #tpu.memory_space<vmem>>, %arg5: memref<128x128xf32, #tpu.memory_space<vmem>>) attributes {dimension_semantics = [#tpu.dimension_semantics<parallel>, #tpu.dimension_semantics<parallel>], iteration_bounds = array<i64: 4, 1>, scalar_prefetch = 0 : i64, scratch_operands = 0 : i64, tpu.core_type = #tpu.core_type<tc>, window_params = [{transform_indices = @transform_0, window_bounds = array<i64: 128, 128>}, {transform_indices = @transform_1, window_bounds = array<i64: 1, 128>}, {transform_indices = @transform_2, window_bounds = array<i64: 1, 128>}, {transform_indices = @transform_3, window_bounds = array<i64: 128, 128>}]} {
    %c0 = arith.constant 0 : index
    %c0_0 = arith.constant 0 : index
    %0 = vector.load %arg2[%c0, %c0_0] : memref<128x128xf32, #tpu.memory_space<vmem>>, vector<128x128xf32>
    %c0_1 = arith.constant 0 : index
    %c0_2 = arith.constant 0 : index
    %1 = vector.load %arg3[%c0_1, %c0_2] : memref<1x128xf32, #tpu.memory_space<vmem>>, vector<1x128xf32>
    %2 = vector.broadcast %1 : vector<1x128xf32> to vector<128x128xf32>
    %3 = arith.mulf %0, %2 : vector<128x128xf32>
    %c0_3 = arith.constant 0 : index
    %c0_4 = arith.constant 0 : index
    %4 = vector.load %arg4[%c0_3, %c0_4] : memref<1x128xf32, #tpu.memory_space<vmem>>, vector<1x128xf32>
    %5 = vector.broadcast %4 : vector<1x128xf32> to vector<128x128xf32>
    %6 = arith.addf %3, %5 : vector<128x128xf32>
    %c0_5 = arith.constant 0 : index
    %c0_6 = arith.constant 0 : index
    %7 = vector.load %arg5[%c0_5, %c0_6] : memref<128x128xf32, #tpu.memory_space<vmem>>, vector<128x128xf32>
    tpu.vector_store %arg5[%c0_5, %c0_6], %6 {strides = array<i32>} : memref<128x128xf32, #tpu.memory_space<vmem>>, vector<128x128xf32>,
    return
  }
  func.func @transform_0(%arg0: i32, %arg1: i32) -> (i32, i32) {
    %c0_i32 = arith.constant 0 : i32
    return %arg0, %arg1 : i32, i32
  }
  func.func @transform_1(%arg0: i32, %arg1: i32) -> (i32, i32) {
    %c0_i32 = arith.constant 0 : i32
    %c0_i32_0 = arith.constant 0 : i32
    return %c0_i32, %arg1 : i32, i32
  }
  func.func @transform_2(%arg0: i32, %arg1: i32) -> (i32, i32) {
    %c0_i32 = arith.constant 0 : i32
    %c0_i32_0 = arith.constant 0 : i32
    return %c0_i32, %arg1 : i32, i32
  }
  func.func @transform_3(%arg0: i32, %arg1: i32) -> (i32, i32) {
    %c0_i32 = arith.constant 0 : i32
    return %arg0, %arg1 : i32, i32
  }
}

</mosaic_0001>

<bundles_post_ra>
// kernel: tpu_custom_call.1
= control target key start
LH: loop header
LB: loop body
LE: loop exit
PB: predicated region body
PF: predicated region fallthrough
CT: control target
= control target key end

     0   :  { %s925_s0 = inlined_call_operand.hbm [shape: f32[512,128], index: 0, kind: input, shape index: {}]   ;;  %s926_s1 = inlined_call_operand.hbm [shape: f32[1,128], index: 1, kind: input, shape index: {}]   ;;  %s927_s2 = inlined_call_operand.vmem [shape: f32[1,128], index: 2, kind: input, shape index: {}]   ;;  %s928_s3 = inlined_call_operand.hbm [shape: f32[512,128], index: 3, kind: output, shape index: {}]  }
   0x1   :  { %929 = sst [smem:[#allocation11_spill]] %s926_s1 }
   0x2   :  { %8 = vsyncpa [#allocation3], 0 }
   0x3   :  { %10 = vsyncpa [#allocation3 + $0x1], 0 }
   0x4   :  { %11 = vsyncpa [#allocation6], 0 }
   0x5   :  { %12 = vsyncpa [#allocation4], 0 }
   0x6   :  { %14 = vsyncpa [#allocation4 + $0x1], 0  ;;  %s714_s12 = smov 0   ;;  %s716_s13 = smov 0  }
   0x7   :  { %s718_s14 = smov 0   ;;  %s720_s15 = smov 0  }
   0x8   :  { %s722_s16 = smov 0   ;;  %s724_s17 = smov 0  }
   0x9 LB: > { %s442_s18 = sadd.s32 4294967295, %s687_s17   ;;  %s443_s19 = sadd.s32 4294967294, %s687_s17   ;;  %s687_s17 = sphi %s724_s17, %s20_s17   ;;  %s683_s16 = sphi %s722_s16, %s942_s16   ;;  %s679_s15 = sphi %s720_s15, %s941_s15   ;;  %s675_s14 = sphi %s718_s14, %s940_s14   ;;  %s671_s13 = sphi %s716_s13, %s939_s13   ;;  %s667_s12 = sphi %s714_s12, %s938_s12  }
   0xa   : > { %s41_s20 = sadd.s32 1, %s675_s14  ;;  %p48_p0 = scmp.ne.s32.totalorder %s675_s14, %s671_s13 }
   0xb   : > { %p49_p1 = scmp.eq.s32.totalorder %s687_s17, 0  ;;  %p54_p2 = scmp.ne.s32.totalorder %s671_s13, %s667_s12 }
   0xc   : > { %p752_p3 = scmp.eq.s32.totalorder %s442_s18, 0  ;;  %p132_p4 = scmp.eq.s32.totalorder %s442_s18, 3 }
   0xd   : > { %p756_p5 = por %p49_p1, %p48_p0  ;;  %p138_p6 = scmp.eq.s32.totalorder %s443_s19, 3 }
   0xe   : > { %p762_p7 = por %p752_p3, %p54_p2  ;;  %p766_p8 = por %p132_p4, %p48_p0 }
   0xf   : > { %p770_p9 = por %p138_p6, %p54_p2  ;;  %p444_p10 = scmp.ge.s32.totalorder %s687_s17, 1 }
  0x10   : > { %p145_p11 = scmp.lt.s32.totalorder %s687_s17, 5  ;;  %s935_s1 = sld [smem:[#allocation11_spill]] }
  0x11   : > { %s689_s30 = smov [#allocation5]   ;;  %p483_p0 = scmp.lt.s32.totalorder %s687_s17, 4 }
  0x12   : > { %p779_p12 = pnand %p444_p10, %p145_p11  ;;  %s160_s4 = sshll.u32 %s689_s30, 4  ;;  %s161_s4 = int_to_ptr.vmem [resolvable:$true] %s160_s4 }
  0x13   : > { %p790_p2 = pnand %p483_p0, %p756_p5  ;;  %s32_s6 = sadd.s32 1, %s683_s16 }
  0x14   : > { %p470_p13 = pneg %p779_p12  ;;  %p34_p4 = scmp.ge.s32.totalorder %s32_s6, 4 }
  0x15   : > { %s177_s7 = sand.u32 1, %s675_s14   ;;  %s460_s10 = sshll.u32 %s683_s16, 7 }
  0x16   : > { %s158_s28 = sshll.u32 %s935_s1, 4  ;;  %p471_p1 = pnand %p470_p13, %p752_p3  ;;  %s159_s28 = int_to_ptr.hbm [resolvable:$true] %s158_s28 }
  0x17   : > { %s944_s6 = smov (%p34_p4, %s32_s6), 0  ;;  %s448_s8 = sshll.u32 %s177_s7, 7 }
  0x18   : > { %473 = dma.hbm_to_vmem [thread:$0]  (!%p471_p1), %s159_s28, 16, %s161_s4, [#allocation6]  }
  0x19   : > { %s36_s9 = ssub.s32 %s683_s16, %s944_s6  ;;  %s187_s19 = scalar_lea.hbm %s925_s0, %s460_s10 }
  0x1a   : > { %p39_p6 = scmp.eq.s32.totalorder %s36_s9, 0  ;;  %s181_s22 = scalar_lea.vmem [#allocation2], %s448_s8 }
  0x1b   : > { %s190_s26 = sshll.u32 %s181_s22, 4  ;;  %s188_s30 = sshll.u32 %s187_s19, 4  ;;  %s191_s26 = int_to_ptr.vmem [resolvable:$true] %s190_s26  ;;  %s189_s30 = int_to_ptr.hbm [resolvable:$true] %s188_s30 }
  0x1c   : > { %s807_s27 = scalar_select %p39_p6, %s675_s14, %s41_s20  }
  0x1d   : > { %s178_s28 = scalar_lea.sflag [#allocation3], %s177_s7  ;;  %s690_s4 = smov 128  }
  0x1e   : > { %s691_s1 = smov 8   ;;  %202 = sbr.rel (%p779_p12) target bundleno = 63 (0x3f), region = 32 }
  0x1f   : > { %477 = dma.hbm_to_vmem [thread:$0]  (!%p790_p2), %s189_s30, 2048, %s191_s26, %s178_s28, %s690_s4, %s690_s4, %s691_s1  }
  0x20   : > { %s814_s9 = sand.u32 (!%p779_p12), 1, %s671_s13  }
  0x21   : > { %s452_s20 = sshll.u32 (!%p779_p12), %s814_s9, 7  ;;  %s205_s8 = scalar_lea.sflag (!%p779_p12), [#allocation3], %s814_s9 }
  0x22   : > { %s820_s10 = scalar_lea.vmem (!%p779_p12), [#allocation2], %s452_s20 }
  0x23   : > { %654 = dma.done.wait (%p762_p7), %s205_s8, 2048  }
  0x24   : > { %656 = vsyncadd (%p762_p7), %s205_s8, 4294965248 }
  0x25   : > { %658 = dma.done.wait (%p752_p3), [#allocation6], 16  }
  0x26   : > { %660 = vsyncadd (%p752_p3), [#allocation6], 4294967280  ;;  %v245_v0 = vld [vmem:[%s820_s10] sm:$0xff]  ;;  %v246_v3 = vld [vmem:[%s820_s10 + $0x8] sm:$0xff]  ;;  %s852_s21 = scalar_lea.vmem [#allocation7], %s452_s20  ;;  %s461_s23 = sshll.u32 %s679_s15, 7 }
  0x27   : > { %v539_v1 = vld [vmem:[#allocation5] ss:$0 sm:$0xff]  ;;  %v247_v6 = vld [vmem:[%s820_s10 + $0x10] sm:$0xff]  ;;  %v248_v7 = vld [vmem:[%s820_s10 + $0x18] sm:$0xff]  ;;  %s330_s15 = scalar_lea.hbm %s928_s3, %s461_s23  ;;  %s331_s11 = sshll.u32 %s852_s21, 4  ;;  %s332_s11 = int_to_ptr.vmem [resolvable:$true] %s331_s11 }
  0x28   : > { %v834_v2 = vld [vmem:[%s927_s2] ss:$0 sm:$0xff]  ;;  %v265_v4 = vmul.f32 %v539_v1, %v245_v0  ;;  %v266_v5 = vmul.f32 %v539_v1, %v246_v3  ;;  %v267_v9 = vmul.f32 %v539_v1, %v247_v6  ;;  %v268_v10 = vmul.f32 %v539_v1, %v248_v7  ;;  %v250_v12 = vld [vmem:[%s820_s10 + $0x28] sm:$0xff]  ;;  %v251_v13 = vld [vmem:[%s820_s10 + $0x30] sm:$0xff]  ;;  %s333_s18 = sshll.u32 %s330_s15, 4  ;;  %s318_s19 = scalar_lea.sflag [#allocation4], %s814_s9  ;;  %s334_s18 = int_to_ptr.hbm [resolvable:$true] %s333_s18 }
  0x29   : > { %v249_v8 = vld [vmem:[%s820_s10 + $0x20] sm:$0xff]  ;;  %v252_v14 = vld [vmem:[%s820_s10 + $0x38] sm:$0xff]  ;;  %v270_v17 = vmul.f32 %v539_v1, %v250_v12  ;;  %v271_v18 = vmul.f32 %v539_v1, %v251_v13  ;;  %v254_v20 = vld [vmem:[%s820_s10 + $0x48] sm:$0xff]  ;;  %s615_s22 = sshra.s32 %s334_s18, 4  ;;  %s621_s4 = scalar_lea.hbm %s928_s3, 512  ;;  %s616_s22 = int_to_ptr.hbm [resolvable:$true] %s615_s22 }
  0x2a   : > { %v269_v11 = vmul.f32 %v539_v1, %v249_v8  ;;  %v285_v15 = vadd.f32 %v834_v2, %v265_v4  ;;  %v286_v16 = vadd.f32 %v834_v2, %v266_v5  ;;  %v253_v19 = vld [vmem:[%s820_s10 + $0x40] sm:$0xff]  ;;  %v287_v21 = vadd.f32 %v834_v2, %v267_v9  ;;  %v255_v24 = vld [vmem:[%s820_s10 + $0x50] sm:$0xff]  ;;  %v256_v27 = vld [vmem:[%s820_s10 + $0x58] sm:$0xff]  ;;  %s617_s26 = scalar_lea.hbm %s616_s22, 128  ;;  %p622_p10 = scmp.lt.s32.totalorder %s616_s22, %s928_s3 }
  0x2b   : > { %v288_v22 = vadd.f32 %v834_v2, %v268_v10  ;;  %v272_v23 = vmul.f32 %v539_v1, %v252_v14  ;;  %v273_v26 = vmul.f32 %v539_v1, %v253_v19  ;;  %v290_v28 = vadd.f32 %v834_v2, %v270_v17  ;;  %v257_v30 = vld [vmem:[%s820_s10 + $0x60] sm:$0xff]  ;;  %v258_v33 = vld [vmem:[%s820_s10 + $0x68] sm:$0xff]  ;;  %v259_v36 = vld [vmem:[%s820_s10 + $0x70] sm:$0xff]  ;;  %p618_p3 = scmp.ne.s32.totalorder %s616_s22, %s617_s26  ;;  %p623_p11 = scmp.lt.s32.totalorder %s621_s4, %s617_s26 }
  0x2c   : > { %301 = vst [vmem:[%s852_s21] sm:$0xff] %v285_v15  ;;  %v289_v25 = vadd.f32 %v834_v2, %v269_v11  ;;  %v274_v29 = vmul.f32 %v539_v1, %v254_v20  ;;  %v291_v31 = vadd.f32 %v834_v2, %v271_v18  ;;  %v275_v32 = vmul.f32 %v539_v1, %v255_v24  ;;  %v260_v39 = vld [vmem:[%s820_s10 + $0x78] sm:$0xff] }
  0x2d   : > { %302 = vst [vmem:[%s852_s21 + $0x8] sm:$0xff] %v286_v16  ;;  %v292_v34 = vadd.f32 %v834_v2, %v272_v23  ;;  %v276_v35 = vmul.f32 %v539_v1, %v256_v27  ;;  %v293_v37 = vadd.f32 %v834_v2, %v273_v26  ;;  %v277_v38 = vmul.f32 %v539_v1, %v257_v30  ;;  %p619_p5 = pnand %p618_p3, %p766_p8  ;;  %p624_p12 = por %p623_p11, %p622_p10 }
  0x2e   : > { %303 = vst [vmem:[%s852_s21 + $0x10] sm:$0xff] %v287_v21  ;;  %v294_v40 = vadd.f32 %v834_v2, %v274_v29  ;;  %v278_v41 = vmul.f32 %v539_v1, %v258_v33  ;;  %v295_v42 = vadd.f32 %v834_v2, %v275_v32  ;;  %v279_v43 = vmul.f32 %v539_v1, %v259_v36 }
  0x2f   : > { %304 = vst [vmem:[%s852_s21 + $0x18] sm:$0xff] %v288_v22  ;;  %v296_v44 = vadd.f32 %v834_v2, %v276_v35  ;;  %v280_v45 = vmul.f32 %v539_v1, %v260_v39  ;;  %v297_v46 = vadd.f32 %v834_v2, %v277_v38  ;;  %p620_p7 = pneg %p619_p5 }
  0x30   : > { %305 = vst [vmem:[%s852_s21 + $0x20] sm:$0xff] %v289_v25  ;;  %v298_v47 = vadd.f32 %v834_v2, %v278_v41  ;;  %v299_v48 = vadd.f32 %v834_v2, %v279_v43 }
  0x31   : > { %306 = vst [vmem:[%s852_s21 + $0x28] sm:$0xff] %v290_v28  ;;  %v300_v49 = vadd.f32 %v834_v2, %v280_v45  ;;  %p625_p13 = pnand %p624_p12, %p620_p7 }
  0x32   : > { %307 = vst [vmem:[%s852_s21 + $0x30] sm:$0xff] %v291_v31 }
  0x33   : > { %308 = vst [vmem:[%s852_s21 + $0x38] sm:$0xff] %v292_v34 }
  0x34   : > { %309 = vst [vmem:[%s852_s21 + $0x40] sm:$0xff] %v293_v37 }
  0x35   : > { %310 = vst [vmem:[%s852_s21 + $0x48] sm:$0xff] %v294_v40 }
  0x36   : > { %311 = vst [vmem:[%s852_s21 + $0x50] sm:$0xff] %v295_v42 }
  0x37   : > { %312 = vst [vmem:[%s852_s21 + $0x58] sm:$0xff] %v296_v44 }
  0x38   : > { %313 = vst [vmem:[%s852_s21 + $0x60] sm:$0xff] %v297_v46 }
  0x39   : > { %314 = vst [vmem:[%s852_s21 + $0x68] sm:$0xff] %v298_v47 }
  0x3a   : > { %315 = vst [vmem:[%s852_s21 + $0x70] sm:$0xff] %v299_v48 }
  0x3b   : > { %316 = vst [vmem:[%s852_s21 + $0x78] sm:$0xff] %v300_v49 }
  0x3c   : > { %628 = shalt.err (!%p625_p13)
}
  0x3d   : > { %s692_s9 = smov 128   ;;  %s693_s10 = smov 8  }
  0x3e   : > { %468 = dma.vmem_to_hbm [thread:$0]  (%p766_p8), %s332_s11, 2048, %s334_s18, %s318_s19, %s692_s9, %s692_s9, %s693_s10  }
  0x3f PF: > { %p485_p0 = scmp.ge.s32.totalorder %s687_s17, 2  ;;  %s348_s1 = sand.u32 1, %s667_s12  }
  0x40   : > { %s349_s29 = scalar_lea.sflag [#allocation4], %s348_s1 }
  0x41   : > { %p479_p1 = pnand %p485_p0, %p770_p9 }
  0x43   : > { %p480_p2 = pneg %p479_p1 }
  0x45   : > { %662 = dma.done.wait (%p480_p2), %s349_s29, 2048  }
  0x46   : > { %664 = vsyncadd (%p480_p2), %s349_s29, 4294965248  ;;  %s20_s17 = sadd.s32 1, %s687_s17   ;;  %s938_s12 = smov %s671_s13 }
  0x47   : > { %p17_p4 = scmp.ge.s32.totalorder %s20_s17, 6   ;;  %s939_s13 = smov %s675_s14 }
  0x48   : > { %s940_s14 = smov %s807_s27  ;;  %s941_s15 = smov %s683_s16 }
  0x49   : > { %s942_s16 = smov %s944_s6  ;;  %19 = sbr.rel (!%p17_p4) target bundleno = 9 (0x9), region = 85 }
  0x4e   :  { %355 = vsyncpa [#allocation3], 1 }
  0x4f   :  { %357 = vsyncpa [#allocation3 + $0x1], 1 }
  0x50   :  { %358 = vsyncpa [#allocation6], 1 }
  0x51   :  { %359 = vsyncpa [#allocation4], 1 }
  0x52   :  { %361 = vsyncpa [#allocation4 + $0x1], 1 }

</bundles_post_ra>
